<compile_context>
chip_gen: v6e
topology: v6e:2x2x1
jax: 0.10.0
libtpu: 0.0.40
codegen_flags: <defaults>
</compile_context>

<pallas_src>
import jax
import jax.numpy as jnp
from jax import lax
from jax.experimental import pallas as pl
from jax.experimental.pallas import tpu as pltpu


def _round_up(a: int, b: int) -> int:
    return ((a + b - 1) // b) * b


def _vmem_limit_bytes() -> int:
    """Per-generation scoped-VMEM budget (~3/4 of physical, capped at 96 MiB)."""
    cap = 64 * 1024 * 1024
    try:
        info = pltpu.get_tpu_info()
        cap = int(getattr(info, "vmem_capacity_bytes", cap) or cap)
    except Exception:
        pass  # fall back to the conservative default
    return int(max(32 * 1024 * 1024, min(cap * 3 // 4, 96 * 1024 * 1024)))


def _make_mlp_kernel(n_chunks: int, chunk_b: int):
    """Kernel over x^T [in_pad, tile_b] -> out^T [out_pad, tile_b] (batch = lanes)."""
    unroll = n_chunks if n_chunks <= 8 else 8

    def kernel(xt_ref, w1_ref, b1_ref, w2_ref, b2_ref, w3_ref, b3_ref, ot_ref):
        # Resident parameters: loaded once per grid step (tiny, stay on chip).
        w1 = w1_ref[...]          # [hidden, in_pad]   bf16
        w2 = w2_ref[...]          # [hidden, hidden]   bf16
        w3 = w3_ref[...]          # [out_pad, hidden]  bf16
        b1 = b1_ref[...]          # [hidden, 1]        f32 (lane-broadcast in add)
        b2 = b2_ref[...]          # [hidden, 1]        f32
        b3 = b3_ref[...]          # [out_pad, 1]       f32

        def chunk(c, carry):
            j = pl.multiple_of(c * chunk_b, chunk_b)
            x = xt_ref[:, pl.ds(j, chunk_b)]            # [in_pad, chunk] bf16
            h = jnp.dot(w1, x, preferred_element_type=jnp.float32) + b1
            h = jnp.maximum(h, 0.0)                     # ReLU (f32, VPU)
            h = jnp.dot(w2, h.astype(jnp.bfloat16),
                        preferred_element_type=jnp.float32) + b2
            h = jnp.maximum(h, 0.0)
            o = jnp.dot(w3, h.astype(jnp.bfloat16),
                        preferred_element_type=jnp.float32) + b3
            # Dropout(p=0.0) == identity; no BatchNorm (use_batch_norm=False).
            # Dense, unmasked 128-lane stores (batch is the lane dim).
            ot_ref[:, pl.ds(j, chunk_b)] = o.astype(ot_ref.dtype)
            return carry

        lax.fori_loop(0, n_chunks, chunk, None, unroll=unroll)

    return kernel


def mlp_forward(x, params, *, tile_b: int = 32768, chunk_b: int = 512):
    """Forward pass of the 3-layer MLP.

    x: [B, input_size] float; cast to bf16 at the HBM boundary (documented
       divergence from the f32 PyTorch reference, ~1e-2 level).
    params: dict of [in, out] weights and [1, out] biases (f32).
    Returns [B, output_size] float32.
    """
    B, input_size = x.shape
    output_size = params["w3"].shape[1]

    # Lane-dim tiling: chunks are multiples of 128 lanes; tiles are multiples
    # of a chunk; aim for >=4 grid steps when the batch permits so v7x's two
    # TensorCores each get >=2 steps under the "parallel" grid axis.
    chunk_b = _round_up(max(int(chunk_b), 128), 128)
    b_ceil = _round_up(max(B, 1), chunk_b)
    tile_target = max(chunk_b, _round_up(-(-b_ceil // 4), chunk_b))
    tile_b = max(chunk_b, _round_up(min(int(tile_b), tile_target), chunk_b))
    tile_b = min(tile_b, b_ceil)
    Bp = _round_up(b_ceil, tile_b)
    n_chunks = tile_b // chunk_b

    # Sublane-align the small feature dims.
    in_pad = _round_up(input_size, 8)
    out_pad = _round_up(output_size, 8)

    # Layout plumbing (outside the kernel): bf16 at the HBM boundary, batch on
    # the lane axis, zero padding for alignment.  Padded batch columns produce
    # garbage (bias->ReLU chains) and are sliced off below; padded feature
    # rows/cols are zeros and contribute nothing to the matmuls.
    xT = jnp.pad(x.astype(jnp.bfloat16),
                 ((0, Bp - B), (0, in_pad - input_size))).T            # [in_pad, Bp]
    w1t = jnp.pad(params["w1"].astype(jnp.bfloat16).T,
                  ((0, 0), (0, in_pad - input_size)))                  # [hidden, in_pad]
    w2t = params["w2"].astype(jnp.bfloat16).T                          # [hidden, hidden]
    w3t = jnp.pad(params["w3"].astype(jnp.bfloat16).T,
                  ((0, out_pad - output_size), (0, 0)))                # [out_pad, hidden]
    b1t = params["b1"].astype(jnp.float32).T                           # [hidden, 1]
    b2t = params["b2"].astype(jnp.float32).T                           # [hidden, 1]
    b3t = jnp.pad(params["b3"].astype(jnp.float32).T,
                  ((0, out_pad - output_size), (0, 0)))                # [out_pad, 1]

    grid = (Bp // tile_b,)
    kernel = _make_mlp_kernel(n_chunks, chunk_b)

    def resident(shape):
        return pl.BlockSpec(shape, lambda i: (0, 0))

    out_t = pl.pallas_call(
        kernel,
        out_shape=jax.ShapeDtypeStruct((out_pad, Bp), jnp.float32),
        grid=grid,
        in_specs=[
            pl.BlockSpec((in_pad, tile_b), lambda i: (0, i)),          # streamed x^T
            resident(w1t.shape), resident(b1t.shape),
            resident(w2t.shape), resident(b2t.shape),
            resident(w3t.shape), resident(b3t.shape),
        ],
        out_specs=pl.BlockSpec((out_pad, tile_b), lambda i: (0, i)),
        compiler_params=pltpu.CompilerParams(
            dimension_semantics=("parallel",),          # megacore split on v7x
            vmem_limit_bytes=_vmem_limit_bytes(),
        ),
    )(xT, w1t, b1t, w2t, b2t, w3t, b3t)

    # Transpose back and drop padding (keep this slice: padded batch columns
    # hold garbage from the bias->ReLU chain).
    return out_t[:output_size, :B].T


def init_params(key, input_size, hidden_size, output_size):
    """PyTorch nn.Linear-style init (uniform +-1/sqrt(fan_in)); weights stored [in, out]."""
    ks = jax.random.split(key, 6)

    def linear(kw, kb, fan_in, fan_out):
        bound = 1.0 / jnp.sqrt(fan_in)
        w = jax.random.uniform(kw, (fan_in, fan_out), jnp.float32, -bound, bound)
        b = jax.random.uniform(kb, (1, fan_out), jnp.float32, -bound, bound)
        return w, b

    w1, b1 = linear(ks[0], ks[1], input_size, hidden_size)
    w2, b2 = linear(ks[2], ks[3], hidden_size, hidden_size)
    w3, b3 = linear(ks[4], ks[5], hidden_size, output_size)
    return dict(w1=w1, b1=b1, w2=w2, b2=b2, w3=w3, b3=b3)


def mlp_ref_bf16(x, p):
    """Plain-JAX reference replicating the kernel's bf16-operand / f32-accum math."""
    c = lambda a: a.astype(jnp.bfloat16)
    h = jnp.dot(c(x), c(p["w1"]), preferred_element_type=jnp.float32) + p["b1"]
    h = jnp.maximum(h, 0.0)
    h = jnp.dot(c(h), c(p["w2"]), preferred_element_type=jnp.float32) + p["b2"]
    h = jnp.maximum(h, 0.0)
    return jnp.dot(c(h), c(p["w3"]), preferred_element_type=jnp.float32) + p["b3"]


def mlp_ref_f32(x, p):
    h = jnp.maximum(x @ p["w1"] + p["b1"], 0.0)
    h = jnp.maximum(h @ p["w2"] + p["b2"], 0.0)
    return h @ p["w3"] + p["b3"]


if __name__ == "__main__":
    key = jax.random.PRNGKey(0)
    k_x, k_p, k_x2 = jax.random.split(key, 3)

    batch = 8
    input_size = 16
    hidden_size = 32
    output_size = 8

    x = jax.random.normal(k_x, (batch, input_size), jnp.float32)
    params = init_params(k_p, input_size, hidden_size, output_size)

    # Small demo (single tile, single in-kernel chunk).
    out = jax.block_until_ready(mlp_forward(x, params))
    assert out.shape == (batch, output_size)
    assert jnp.allclose(out, mlp_ref_bf16(x, params), atol=1e-2, rtol=1e-2)
    assert jnp.allclose(out, mlp_ref_f32(x, params), atol=5e-2, rtol=5e-2)

    # Multi-tile grid + in-kernel chunk loop + batch padding:
    # 600 rows -> 3 tiles of 256 lanes (2 chunks of 128), padded to 768.
    x2 = jax.random.normal(k_x2, (600, input_size), jnp.float32)
    out2 = jax.block_until_ready(mlp_forward(x2, params, tile_b=256, chunk_b=128))
    assert out2.shape == (600, output_size)
    assert jnp.allclose(out2, mlp_ref_bf16(x2, params), atol=1e-2, rtol=1e-2)

    print("KERNEL_OK")
</pallas_src>

<mosaic_0001>
module attributes {stable_mosaic.version = 11 : i64} {
  func.func @kernel(%arg0: i32, %arg1: memref<16x512xbf16, #tpu.memory_space<vmem>>, %arg2: memref<32x16xbf16, #tpu.memory_space<vmem>>, %arg3: memref<32x1xf32, #tpu.memory_space<vmem>>, %arg4: memref<32x32xbf16, #tpu.memory_space<vmem>>, %arg5: memref<32x1xf32, #tpu.memory_space<vmem>>, %arg6: memref<8x32xbf16, #tpu.memory_space<vmem>>, %arg7: memref<8x1xf32, #tpu.memory_space<vmem>>, %arg8: memref<8x512xf32, #tpu.memory_space<vmem>>) attributes {dimension_semantics = [#tpu.dimension_semantics<parallel>], iteration_bounds = array<i64: 1>, scalar_prefetch = 0 : i64, scratch_operands = 0 : i64, tpu.core_type = #tpu.core_type<tc>, window_params = [{transform_indices = @transform_0, window_bounds = array<i64: 16, 512>}, {pipeline_mode = #tpu.pipeline_mode<synchronous>, transform_indices = @transform_1, window_bounds = array<i64: 32, 16>}, {pipeline_mode = #tpu.pipeline_mode<synchronous>, transform_indices = @transform_2, window_bounds = array<i64: 32, 1>}, {pipeline_mode = #tpu.pipeline_mode<synchronous>, transform_indices = @transform_3, window_bounds = array<i64: 32, 32>}, {pipeline_mode = #tpu.pipeline_mode<synchronous>, transform_indices = @transform_4, window_bounds = array<i64: 32, 1>}, {pipeline_mode = #tpu.pipeline_mode<synchronous>, transform_indices = @transform_5, window_bounds = array<i64: 8, 32>}, {pipeline_mode = #tpu.pipeline_mode<synchronous>, transform_indices = @transform_6, window_bounds = array<i64: 8, 1>}, {transform_indices = @transform_7, window_bounds = array<i64: 8, 512>}]} {
    %c0 = arith.constant 0 : index
    %c0_0 = arith.constant 0 : index
    %0 = vector.load %arg2[%c0, %c0_0] : memref<32x16xbf16, #tpu.memory_space<vmem>>, vector<32x16xbf16>
    %c0_1 = arith.constant 0 : index
    %c0_2 = arith.constant 0 : index
    %1 = vector.load %arg4[%c0_1, %c0_2] : memref<32x32xbf16, #tpu.memory_space<vmem>>, vector<32x32xbf16>
    %c0_3 = arith.constant 0 : index
    %c0_4 = arith.constant 0 : index
    %2 = vector.load %arg6[%c0_3, %c0_4] : memref<8x32xbf16, #tpu.memory_space<vmem>>, vector<8x32xbf16>
    %c0_5 = arith.constant 0 : index
    %c0_6 = arith.constant 0 : index
    %3 = vector.load %arg3[%c0_5, %c0_6] : memref<32x1xf32, #tpu.memory_space<vmem>>, vector<32x1xf32>
    %c0_7 = arith.constant 0 : index
    %c0_8 = arith.constant 0 : index
    %4 = vector.load %arg5[%c0_7, %c0_8] : memref<32x1xf32, #tpu.memory_space<vmem>>, vector<32x1xf32>
    %c0_9 = arith.constant 0 : index
    %c0_10 = arith.constant 0 : index
    %5 = vector.load %arg7[%c0_9, %c0_10] : memref<8x1xf32, #tpu.memory_space<vmem>>, vector<8x1xf32>
    %c0_i32 = arith.constant 0 : i32
    %c512_i32 = arith.constant 512 : i32
    %6 = arith.muli %c0_i32, %c512_i32 : i32
    %7 = tpu.assume_multiple %6, 512 : i32
    %c0_11 = arith.constant 0 : index
    %8 = arith.index_cast %7 : i32 to index
    %9 = vector.load %arg1[%c0_11, %8] : memref<16x512xbf16, #tpu.memory_space<vmem>>, vector<16x512xbf16>
    %cst = arith.constant dense<0.000000e+00> : vector<32x512xf32>
    %10 = tpu.matmul %0, %9, %cst {dimension_numbers = #tpu.dot_dimension_numbers<[1], [0], [0], [1], [0, 0, 1, 1], [], []>} : vector<32x16xbf16>, vector<16x512xbf16>, vector<32x512xf32> -> vector<32x512xf32>
    %11 = vector.broadcast %3 : vector<32x1xf32> to vector<32x512xf32>
    %12 = arith.addf %10, %11 : vector<32x512xf32>
    %cst_12 = arith.constant 0.000000e+00 : f32
    %13 = vector.broadcast %cst_12 : f32 to vector<32x512xf32>
    %14 = arith.maximumf %12, %13 : vector<32x512xf32>
    %15 = arith.truncf %14 : vector<32x512xf32> to vector<32x512xbf16>
    %cst_13 = arith.constant dense<0.000000e+00> : vector<32x512xf32>
    %16 = tpu.matmul %1, %15, %cst_13 {dimension_numbers = #tpu.dot_dimension_numbers<[1], [0], [0], [1], [0, 0, 1, 1], [], []>} : vector<32x32xbf16>, vector<32x512xbf16>, vector<32x512xf32> -> vector<32x512xf32>
    %17 = vector.broadcast %4 : vector<32x1xf32> to vector<32x512xf32>
    %18 = arith.addf %16, %17 : vector<32x512xf32>
    %cst_14 = arith.constant 0.000000e+00 : f32
    %19 = vector.broadcast %cst_14 : f32 to vector<32x512xf32>
    %20 = arith.maximumf %18, %19 : vector<32x512xf32>
    %21 = arith.truncf %20 : vector<32x512xf32> to vector<32x512xbf16>
    %cst_15 = arith.constant dense<0.000000e+00> : vector<8x512xf32>
    %22 = tpu.matmul %2, %21, %cst_15 {dimension_numbers = #tpu.dot_dimension_numbers<[1], [0], [0], [1], [0, 0, 1, 1], [], []>} : vector<8x32xbf16>, vector<32x512xbf16>, vector<8x512xf32> -> vector<8x512xf32>
    %23 = vector.broadcast %5 : vector<8x1xf32> to vector<8x512xf32>
    %24 = arith.addf %22, %23 : vector<8x512xf32>
    %c0_16 = arith.constant 0 : index
    %25 = arith.index_cast %7 : i32 to index
    %26 = vector.load %arg8[%c0_16, %25] : memref<8x512xf32, #tpu.memory_space<vmem>>, vector<8x512xf32>
    tpu.vector_store %arg8[%c0_16, %25], %24 {strides = array<i32>} : memref<8x512xf32, #tpu.memory_space<vmem>>, vector<8x512xf32>,
    %c1_i32 = arith.constant 1 : i32
    return
  }
  func.func @transform_0(%arg0: i32) -> (i32, i32) {
    %c0_i32 = arith.constant 0 : i32
    %c0_i32_0 = arith.constant 0 : i32
    return %c0_i32, %arg0 : i32, i32
  }
  func.func @transform_1(%arg0: i32) -> (i32, i32) {
    %c0_i32 = arith.constant 0 : i32
    %c0_i32_0 = arith.constant 0 : i32
    %c0_i32_1 = arith.constant 0 : i32
    return %c0_i32, %c0_i32_0 : i32, i32
  }
  func.func @transform_2(%arg0: i32) -> (i32, i32) {
    %c0_i32 = arith.constant 0 : i32
    %c0_i32_0 = arith.constant 0 : i32
    %c0_i32_1 = arith.constant 0 : i32
    return %c0_i32, %c0_i32_0 : i32, i32
  }
  func.func @transform_3(%arg0: i32) -> (i32, i32) {
    %c0_i32 = arith.constant 0 : i32
    %c0_i32_0 = arith.constant 0 : i32
    %c0_i32_1 = arith.constant 0 : i32
    return %c0_i32, %c0_i32_0 : i32, i32
  }
  func.func @transform_4(%arg0: i32) -> (i32, i32) {
    %c0_i32 = arith.constant 0 : i32
    %c0_i32_0 = arith.constant 0 : i32
    %c0_i32_1 = arith.constant 0 : i32
    return %c0_i32, %c0_i32_0 : i32, i32
  }
  func.func @transform_5(%arg0: i32) -> (i32, i32) {
    %c0_i32 = arith.constant 0 : i32
    %c0_i32_0 = arith.constant 0 : i32
    %c0_i32_1 = arith.constant 0 : i32
    return %c0_i32, %c0_i32_0 : i32, i32
  }
  func.func @transform_6(%arg0: i32) -> (i32, i32) {
    %c0_i32 = arith.constant 0 : i32
    %c0_i32_0 = arith.constant 0 : i32
    %c0_i32_1 = arith.constant 0 : i32
    return %c0_i32, %c0_i32_0 : i32, i32
  }
  func.func @transform_7(%arg0: i32) -> (i32, i32) {
    %c0_i32 = arith.constant 0 : i32
    %c0_i32_0 = arith.constant 0 : i32
    return %c0_i32, %arg0 : i32, i32
  }
}

</mosaic_0001>

<bundles_post_ra>
// kernel: tpu_custom_call.1
= control target key start
LH: loop header
LB: loop body
LE: loop exit
PB: predicated region body
PF: predicated region fallthrough
CT: control target
= control target key end

     0   :  { %v566_v2 = vmov 0   ;;  %vm100_vm0 = vcmask 130048   ;;  %s687_s0 = inlined_call_operand.vmem [shape: bf16[16,512], index: 0, kind: input, shape index: {}]   ;;  %s688_s1 = inlined_call_operand.vmem [shape: bf16[32,16], index: 1, kind: input, shape index: {}]   ;;  %s689_s2 = inlined_call_operand.vmem [shape: f32[32,1], index: 2, kind: input, shape index: {}]   ;;  %s690_s3 = inlined_call_operand.vmem [shape: bf16[32,32], index: 3, kind: input, shape index: {}]   ;;  %s691_s4 = inlined_call_operand.vmem [shape: f32[32,1], index: 4, kind: input, shape index: {}]   ;;  %s692_s5 = inlined_call_operand.vmem [shape: bf16[8,32], index: 5, kind: input, shape index: {}]   ;;  %s693_s6 = inlined_call_operand.vmem [shape: f32[8,1], index: 6, kind: input, shape index: {}]   ;;  %s694_s7 = inlined_call_operand.hbm [shape: f32[8,512], index: 7, kind: output, shape index: {}]  }
   0x1   :  { %v534_v0 = vld [vmem:[%s687_s0 + $0x4] ss:$16 sps:$4 sm:$0xff]   ;;  %v536_v1 = vld [vmem:[%s687_s0 + $0xc] ss:$16 sps:$4 sm:$0xff]   ;;  %139 = vmatprep.mubr.bf16.mxu0 %v566_v2  ;;  %192 = vmatprep.mubr.bf16.mxu1 %v566_v2  ;;  %v538_v3 = vld [vmem:[%s687_s0] ss:$16 sps:$4 sm:$0xff]  }
   0x2   :  { %121 = vmatprep.subr.bf16.mxu0 %v534_v0  ;;  %v539_v4 = vld [vmem:[%s687_s0 + $0x8] ss:$16 sps:$4 sm:$0xff]   ;;  %532 = vset.pattern.permute.xlu0 %v566_v2  ;;  %v540_v5 = vld [vmem:[%s688_s1] sm:$0xff]   ;;  %v39_v6 = vld [vmem:[%s689_s2 + $0x10] sm:$0xff] }
   0x3   :  { %174 = vmatprep.subr.bf16.mxu1 %v536_v1  ;;  %533 = vset.pattern.permute.xlu1 %v566_v2  ;;  %v37_v7 = vld [vmem:[%s689_s2] sm:$0xff]  ;;  %v40_v8 = vld [vmem:[%s689_s2 + $0x18] sm:$0xff]  ;;  %v38_v9 = vld [vmem:[%s689_s2 + $0x8] sm:$0xff] }
   0x4   :  { %122 = vmatpush1.bf16.msra.mxu0 %v538_v3  ;;  %175 = vmatpush1.bf16.msra.mxu1 %v539_v4 }
   0x5   :  { %62 = vperm.xlu0 %532, %v39_v6   ;;  %52 = vperm.xlu1 %533, %v37_v7  }
   0x7   :  { %518 = vmatmul.mubr.msk.bf16.vlgmr.msra.gmra.mxu0 %vm100_vm0, %v540_v5  ;;  %520 = vmatmul.mubr.msk.bf16.vlgmr.msra.gmra.mxu1 %vm100_vm0, %v540_v5 }
   0x8   :  { %149 = vmatprep.mubr.bf16.mxu0 %v566_v2  ;;  %202 = vmatprep.mubr.bf16.mxu1 %v566_v2 }
   0x9   :  { %67 = vperm.xlu0 %532, %v40_v8  }
   0xa   :  { %12 = vsyncpa [#allocation3], 0  ;;  %v43_v10 = vld [vmem:[%s691_s4 + $0x10] sm:$0xff]  ;;  %57 = vperm.xlu1 %533, %v38_v9   ;;  %v541_v11 = vld [vmem:[%s688_s1 + $0x8] sm:$0xff]   ;;  %vm267_vm1 = vcmask 261120   ;;  %s567_s8 = smov [#allocation2]  }
   0xb   :  { %v44_v12 = vld [vmem:[%s691_s4 + $0x18] sm:$0xff]  ;;  %v41_v13 = vld [vmem:[%s691_s4] sm:$0xff]  ;;  %v42_v14 = vld [vmem:[%s691_s4 + $0x8] sm:$0xff]  ;;  %s504_s9 = sshll.u32 %s567_s8, 4  ;;  %s505_s9 = int_to_ptr.vmem [resolvable:$true] %s504_s9 }
   0xc   :  { %v45_v15 = vld [vmem:[%s693_s6] sm:$0xff]  ;;  %p549_p1 = scmp.lt.s32.totalorder %s505_s9, %s505_s9 }
   0xd   :  { %249 = vperm.xlu0 %532, %v43_v10  }
   0xe   :  { %254 = vperm.xlu1 %533, %v44_v12  }
   0xf   :  { %519 = vmatmul.mubr.msk.bf16.gmra.mxu0 %vm100_vm0, %v541_v11  ;;  %521 = vmatmul.mubr.msk.bf16.gmra.mxu1 %vm100_vm0, %v541_v11 }
  0x10   :  { %306 = vmatprep.mubr.bf16.mxu0 %v566_v2  ;;  %359 = vmatprep.mubr.bf16.mxu1 %v566_v2 }
  0x11   :  { %239 = vperm.xlu0 %532, %v41_v13   ;;  %v542_v13 = vld [vmem:[%s690_s3] sm:$0xff]  }
  0x12   :  { %244 = vperm.xlu1 %533, %v42_v14   ;;  %v543_v14 = vld [vmem:[%s690_s3 + $0x8] sm:$0xff]  }
  0x15   :  { %406 = vperm.xlu0 %532, %v45_v15  }
  0x80   :  { %v63_v22 = vpop.permute.xlu0 %62  ;;  %v53_v23 = vpop.permute.xlu1 %52 }
  0x84   :  { %v68_v30 = vpop.permute.xlu0 %67 }
  0x85   :  { %v58_v31 = vpop.permute.xlu1 %57 }
  0xc7   :  { %v141_v16 = vpop.f32.mrf.mxu0  ;;  %v194_v17 = vpop.f32.mrf.mxu1 }
  0xc8   :  { %v142_v58 = vadd.f32 %v141_v16, %v53_v23  ;;  %v195_v59 = vadd.f32 %v194_v17, %v53_v23 }
  0xc9   :  { %v143_v18 = vpop.f32.mrf.mxu0  ;;  %v196_v19 = vpop.f32.mrf.mxu1 }
  0xca   :  { %v144_v40 = vadd.f32 %v143_v18, %v53_v23  ;;  %v197_v41 = vadd.f32 %v196_v19, %v53_v23  ;;  %v213_v9 = vmax.f32 %v142_v58, 0.0  ;;  %v215_v10 = vmax.f32 %v195_v59, 0.0 }
  0xcb   :  { %v145_v20 = vpop.f32.mrf.mxu0  ;;  %v198_v21 = vpop.f32.mrf.mxu1 }
  0xcc   :  { %v146_v46 = vadd.f32 %v145_v20, %v58_v31  ;;  %v199_v47 = vadd.f32 %v198_v21, %v58_v31  ;;  %v214_v62 = vmax.f32 %v144_v40, 0.0  ;;  %v216_v63 = vmax.f32 %v197_v41, 0.0  ;;  %v255_v21 = vpop.permute.xlu1 %254 }
  0xcd   :  { %v147_v24 = vpop.f32.mrf.mxu0  ;;  %v200_v25 = vpop.f32.mrf.mxu1 }
  0xce   :  { %v148_v32 = vadd.f32 %v147_v24, %v58_v31  ;;  %v201_v33 = vadd.f32 %v200_v25, %v58_v31  ;;  %v217_v3 = vmax.f32 %v146_v46, 0.0  ;;  %v219_v4 = vmax.f32 %v199_v47, 0.0  ;;  %v250_v24 = vpop.permute.xlu0 %249 }
  0xcf   :  { %v151_v26 = vpop.f32.mrf.mxu0  ;;  %v204_v27 = vpop.f32.mrf.mxu1 }
  0xd0   :  { %v152_v42 = vadd.f32 %v151_v26, %v63_v22  ;;  %v205_v43 = vadd.f32 %v204_v27, %v63_v22  ;;  %v218_v50 = vmax.f32 %v148_v32, 0.0  ;;  %v220_v51 = vmax.f32 %v201_v33, 0.0 }
  0xd1   :  { %v153_v28 = vpop.f32.mrf.mxu0  ;;  %v206_v29 = vpop.f32.mrf.mxu1  ;;  %v229_v11 = vpack.c.bf16 %v217_v3, %v213_v9  ;;  %v231_v12 = vpack.c.bf16 %v219_v4, %v215_v10 }
  0xd2   :  { %v154_v36 = vadd.f32 %v153_v28, %v63_v22  ;;  %v207_v37 = vadd.f32 %v206_v29, %v63_v22  ;;  %v221_v60 = vmax.f32 %v152_v42, 0.0  ;;  %v223_v61 = vmax.f32 %v205_v43, 0.0  ;;  %v245_v29 = vpop.permute.xlu1 %244 }
  0xd3   :  { %v155_v34 = vpop.f32.mrf.mxu0  ;;  %v208_v35 = vpop.f32.mrf.mxu1  ;;  %v230_v7 = vpack.c.bf16 %v218_v50, %v214_v62  ;;  %v232_v8 = vpack.c.bf16 %v220_v51, %v216_v63 }
  0xd4   :  { %v156_v38 = vadd.f32 %v155_v34, %v68_v30  ;;  %v209_v39 = vadd.f32 %v208_v35, %v68_v30  ;;  %v222_v54 = vmax.f32 %v154_v36, 0.0  ;;  %v224_v55 = vmax.f32 %v207_v37, 0.0 }
  0xd5   :  { %v157_v44 = vpop.f32.mrf.mxu0  ;;  %v210_v45 = vpop.f32.mrf.mxu1 }
  0xd6   :  { %v158_v48 = vadd.f32 %v157_v44, %v68_v30  ;;  %v211_v49 = vadd.f32 %v210_v45, %v68_v30  ;;  %v225_v52 = vmax.f32 %v156_v38, 0.0  ;;  %v227_v53 = vmax.f32 %v209_v39, 0.0 }
  0xd8   :  { %v226_v56 = vmax.f32 %v158_v48, 0.0  ;;  %v228_v57 = vmax.f32 %v211_v49, 0.0  ;;  %v233_v5 = vpack.c.bf16 %v225_v52, %v221_v60  ;;  %v235_v6 = vpack.c.bf16 %v227_v53, %v223_v61 }
  0xda   :  { %v234_v0 = vpack.c.bf16 %v226_v56, %v222_v54  ;;  %v236_v1 = vpack.c.bf16 %v228_v57, %v224_v55 }
  0xdc   :  { %286 = vmatprep.subr.bf16.mxu0 %v234_v0  ;;  %339 = vmatprep.subr.bf16.mxu1 %v236_v1 }
  0xdd   :  { %287 = vmatpush1.bf16.msra.mxu0 %v233_v5  ;;  %340 = vmatpush1.bf16.msra.mxu1 %v235_v6 }
  0xde   :  { %288 = vmatprep.subr.bf16.mxu0 %v230_v7  ;;  %341 = vmatprep.subr.bf16.mxu1 %v232_v8 }
  0xe1   :  { %289 = vmatpush1.bf16.msra.mxu0 %v229_v11  ;;  %342 = vmatpush1.bf16.msra.mxu1 %v231_v12  ;;  %v36_v11 = vld [vmem:[%s692_s5] sm:$0xf]  ;;  %s544_s5 = scalar_lea.vmem %s505_s9, 512 }
  0xe2   :  { %p545_p0 = scmp.ne.s32.totalorder %s505_s9, %s544_s5  ;;  %p550_p2 = scmp.lt.s32.totalorder %s544_s5, %s544_s5 }
  0xe4   :  { %524 = vmatmul.mubr.msk.bf16.vlgmr.msra.gmra.mxu0 %vm267_vm1, %v542_v13  ;;  %526 = vmatmul.mubr.msk.bf16.vlgmr.msra.gmra.mxu1 %vm267_vm1, %v542_v13  ;;  %p551_p3 = por %p550_p2, %p549_p1 }
  0xe5   :  { %316 = vmatprep.mubr.bf16.mxu0 %v566_v2  ;;  %369 = vmatprep.mubr.bf16.mxu1 %v566_v2 }
  0xe6   :  { %p552_p4 = pnand %p551_p3, %p545_p0 }
  0xec   :  { %525 = vmatmul.mubr.msk.bf16.gmra.mxu0 %vm267_vm1, %v543_v14  ;;  %527 = vmatmul.mubr.msk.bf16.gmra.mxu1 %vm267_vm1, %v543_v14 }
  0xed   :  { %444 = vmatprep.mubr.bf16.mxu0 %v566_v2  ;;  %485 = vmatprep.mubr.bf16.mxu1 %v566_v2  ;;  %v240_v2 = vpop.permute.xlu0 %239 }
  0xf1   :  { %v407_v12 = vpop.permute.xlu0 %406 }
 0x1a4   :  { %v308_v15 = vpop.f32.mrf.mxu0  ;;  %v361_v16 = vpop.f32.mrf.mxu1 }
 0x1a5   :  { %v309_v56 = vadd.f32 %v308_v15, %v240_v2  ;;  %v362_v57 = vadd.f32 %v361_v16, %v240_v2 }
 0x1a6   :  { %v310_v17 = vpop.f32.mrf.mxu0  ;;  %v363_v18 = vpop.f32.mrf.mxu1 }
 0x1a7   :  { %v311_v38 = vadd.f32 %v310_v17, %v240_v2  ;;  %v364_v39 = vadd.f32 %v363_v18, %v240_v2  ;;  %v380_v7 = vmax.f32 %v309_v56, 0.0  ;;  %v382_v8 = vmax.f32 %v362_v57, 0.0 }
 0x1a8   :  { %v312_v19 = vpop.f32.mrf.mxu0  ;;  %v365_v20 = vpop.f32.mrf.mxu1 }
 0x1a9   :  { %v313_v44 = vadd.f32 %v312_v19, %v245_v29  ;;  %v366_v45 = vadd.f32 %v365_v20, %v245_v29  ;;  %v381_v60 = vmax.f32 %v311_v38, 0.0  ;;  %v383_v61 = vmax.f32 %v364_v39, 0.0 }
 0x1aa   :  { %v314_v22 = vpop.f32.mrf.mxu0  ;;  %v367_v23 = vpop.f32.mrf.mxu1 }
 0x1ab   :  { %v315_v30 = vadd.f32 %v314_v22, %v245_v29  ;;  %v368_v31 = vadd.f32 %v367_v23, %v245_v29  ;;  %v384_v0 = vmax.f32 %v313_v44, 0.0  ;;  %v386_v1 = vmax.f32 %v366_v45, 0.0 }
 0x1ac   :  { %v318_v25 = vpop.f32.mrf.mxu0  ;;  %v371_v26 = vpop.f32.mrf.mxu1 }
 0x1ad   :  { %v319_v40 = vadd.f32 %v318_v25, %v250_v24  ;;  %v372_v41 = vadd.f32 %v371_v26, %v250_v24  ;;  %v385_v48 = vmax.f32 %v315_v30, 0.0  ;;  %v387_v49 = vmax.f32 %v368_v31, 0.0 }
 0x1ae   :  { %v320_v27 = vpop.f32.mrf.mxu0  ;;  %v373_v28 = vpop.f32.mrf.mxu1  ;;  %v396_v9 = vpack.c.bf16 %v384_v0, %v380_v7  ;;  %v398_v10 = vpack.c.bf16 %v386_v1, %v382_v8 }
 0x1af   :  { %v321_v34 = vadd.f32 %v320_v27, %v250_v24  ;;  %v374_v35 = vadd.f32 %v373_v28, %v250_v24  ;;  %v388_v58 = vmax.f32 %v319_v40, 0.0  ;;  %v390_v59 = vmax.f32 %v372_v41, 0.0 }
 0x1b0   :  { %v322_v32 = vpop.f32.mrf.mxu0  ;;  %v375_v33 = vpop.f32.mrf.mxu1  ;;  %v397_v5 = vpack.c.bf16 %v385_v48, %v381_v60  ;;  %v399_v6 = vpack.c.bf16 %v387_v49, %v383_v61 }
 0x1b1   :  { %v323_v36 = vadd.f32 %v322_v32, %v255_v21  ;;  %v376_v37 = vadd.f32 %v375_v33, %v255_v21  ;;  %v389_v52 = vmax.f32 %v321_v34, 0.0  ;;  %v391_v53 = vmax.f32 %v374_v35, 0.0 }
 0x1b2   :  { %v324_v42 = vpop.f32.mrf.mxu0  ;;  %v377_v43 = vpop.f32.mrf.mxu1 }
 0x1b3   :  { %v325_v46 = vadd.f32 %v324_v42, %v255_v21  ;;  %v378_v47 = vadd.f32 %v377_v43, %v255_v21  ;;  %v392_v50 = vmax.f32 %v323_v36, 0.0  ;;  %v394_v51 = vmax.f32 %v376_v37, 0.0 }
 0x1b5   :  { %v393_v54 = vmax.f32 %v325_v46, 0.0  ;;  %v395_v55 = vmax.f32 %v378_v47, 0.0  ;;  %v400_v3 = vpack.c.bf16 %v392_v50, %v388_v58  ;;  %v402_v4 = vpack.c.bf16 %v394_v51, %v390_v59 }
 0x1b7   :  { %v401_v62 = vpack.c.bf16 %v393_v54, %v389_v52  ;;  %v403_v63 = vpack.c.bf16 %v395_v55, %v391_v53 }
 0x1b9   :  { %424 = vmatprep.subr.bf16.mxu0 %v401_v62  ;;  %465 = vmatprep.subr.bf16.mxu1 %v403_v63 }
 0x1ba   :  { %425 = vmatpush1.bf16.msra.mxu0 %v400_v3  ;;  %466 = vmatpush1.bf16.msra.mxu1 %v402_v4 }
 0x1bb   :  { %426 = vmatprep.subr.bf16.mxu0 %v397_v5  ;;  %467 = vmatprep.subr.bf16.mxu1 %v399_v6 }
 0x1be   :  { %427 = vmatpush1.bf16.msra.mxu0 %v396_v9  ;;  %468 = vmatpush1.bf16.msra.mxu1 %v398_v10 }
 0x1c1   :  { %528 = vmatmul.mubr.msk.bf16.vlgmr.msra.gmra.mxu0 %vm267_vm1, %v36_v11  ;;  %529 = vmatmul.mubr.msk.bf16.vlgmr.msra.gmra.mxu1 %vm267_vm1, %v36_v11 }
 0x281   :  { %v446_v13 = vpop.f32.mrf.mxu0  ;;  %v487_v14 = vpop.f32.mrf.mxu1 }
 0x282   :  { %v447_v15 = vadd.f32 %v446_v13, %v407_v12  ;;  %v488_v16 = vadd.f32 %v487_v14, %v407_v12 }
 0x283   :  { %v448_v17 = vpop.f32.mrf.mxu0  ;;  %v489_v18 = vpop.f32.mrf.mxu1 }
 0x284   :  { %494 = vst [vmem:[#allocation2] sm:$0xff] %v447_v15  ;;  %496 = vst [vmem:[#allocation2 + $0x10] sm:$0xff] %v488_v16  ;;  %v449_v19 = vadd.f32 %v448_v17, %v407_v12  ;;  %v490_v20 = vadd.f32 %v489_v18, %v407_v12 }
 0x285   :  { %v450_v21 = vpop.f32.mrf.mxu0  ;;  %v491_v22 = vpop.f32.mrf.mxu1 }
 0x286   :  { %495 = vst [vmem:[#allocation2 + $0x8] sm:$0xff] %v449_v19  ;;  %497 = vst [vmem:[#allocation2 + $0x18] sm:$0xff] %v490_v20 }
 0x287   :  { %v451_v23 = vpop.f32.mrf.mxu0  ;;  %v492_v24 = vpop.f32.mrf.mxu1 }
 0x288   :  { %555 = shalt.err (!%p552_p4)
}
 0x289   :  { %507 = dma.vmem_to_hbm [thread:$0]  %s505_s9, 512, %s694_s7, [#allocation3]  }
 0x28a   :  { %564 = dma.done.wait [#allocation3], 512  }
 0x28b   :  { %565 = vsyncadd [#allocation3], 4294966784 }
 0x28c   :  { %511 = vsyncpa [#allocation3], 1 }

</bundles_post_ra>
